<compile_context>
chip_gen: v7x
topology: tpu7x:2x2x1
jax: 0.10.0
libtpu: 0.0.40
codegen_flags: <defaults>
</compile_context>

<pallas_src>
import functools
import math

import jax
import jax.numpy as jnp
from jax.experimental import pallas as pl
from jax.experimental.pallas import tpu as pltpu


def _pe_flat_kernel(sc_ref, cc_ref, beta_ref, out_ref):
    """One lane-dense (2F, tile_h*w) block of the positional encoding.

    sc_ref  : (2F, L)      sin of the block-invariant angle table C
    cc_ref  : (2F, L)      cos of the block-invariant angle table C
    beta_ref: (1, 2F, 2)   per-step [sin(beta0), cos(beta0)] row phase
    out_ref : (2F, L)      flat CHW output block (L = tile_h * w)

    out = sin(C + beta0) = sin(C)*cos(beta0) + cos(C)*sin(beta0)
    """
    b = beta_ref[...]                  # (1, 2F, 2)
    rsin = b[0, :, 0:1]                # (2F, 1)  sin(beta0)
    rcos = b[0, :, 1:2]                # (2F, 1)  cos(beta0)
    out_ref[...] = (sc_ref[...] * rcos + cc_ref[...] * rsin).astype(out_ref.dtype)


def _vmem_capacity_bytes():
    """Per-core VMEM capacity; conservative (v7x-sized) fallback."""
    try:
        return int(pltpu.get_tpu_info().vmem_capacity_bytes)
    except Exception:  # pragma: no cover - older/newer API or no device info
        return 64 << 20


def _choose_tile_h(h, w, two_f, budget_bytes):
    """Rows per grid step.

    Constraints / preferences:
      * tile_h * w must be a multiple of 128 (lane-dense output block), i.e.
        tile_h a multiple of m = 128 // gcd(w, 128) -- unless a single block
        covers the whole array (block == full extent is always legal).
      * 2x(sin table) + 2x(cos table) + 2x(output block) must fit the budget.
      * prefer >= 2 grid steps (v7x megacore gets work on both TensorCores);
        per-step overhead (~0.35 us) is negligible at these block sizes.
      * prefer a divisor of h (no ragged final block) when it costs < 2x.
    """
    m = 128 // math.gcd(w, 128)
    if h < m:
        return h                      # single full block; L == h*w == full extent
    bytes_per_row = 6 * two_f * w * 4  # sin + cos + out, double-buffered, f32
    rows_cap = budget_bytes // bytes_per_row
    if rows_cap < m:
        return m                      # smallest lane-dense tile (pathological w)
    t_cap = min(rows_cap, h)
    # Aim for ~half of h (>= 2 steps) unless the budget caps us lower.
    target = min(t_cap, max(m, -(-h // 2)))
    t = max((target // m) * m, m)
    divisors = [d for d in range(m, t + 1, m) if h % d == 0]
    if divisors and divisors[-1] * 2 >= t:
        return divisors[-1]
    return t                          # ragged final block handled by cdiv grid


@functools.partial(jax.jit, static_argnames=("size", "dtype"))
def position_embedding_random(gaussian_matrix, size, dtype=jnp.float32):
    """JAX/Pallas equivalent of PositionEmbeddingRandom.forward(size).

    gaussian_matrix: (2, num_pos_feats) float32
    returns        : (2 * num_pos_feats, h, w) `dtype` (PyTorch CHW layout)
    """
    h, w = size
    f = gaussian_matrix.shape[1]
    two_f = 2 * f

    cap = _vmem_capacity_bytes()
    budget = (cap * 9) // 16          # ~56% of VMEM for the six block buffers
    tile_h = _choose_tile_h(h, w, two_f, budget)
    L = tile_h * w
    nsteps = -(-h // tile_h)

    # ---- tiny frequency / phase vectors (all trig lives in the wrapper) ----
    g = gaussian_matrix.astype(jnp.float32)
    two_pi = 2.0 * math.pi
    gx = jnp.tile(g[0], 2) * two_pi                                   # (2F,)
    gy = jnp.tile(g[1], 2) * two_pi                                   # (2F,)
    phase = jnp.concatenate(
        [jnp.zeros((f,), jnp.float32),
         jnp.full((f,), 0.5 * math.pi, jnp.float32)])                 # (2F,)

    # Block-invariant flat angle table C and its sin/cos (resident in VMEM):
    #   C[k, p] = gx[k]*u(p % w) + phase[k] + gy[k]*(2/h)*(p // w)
    p = jnp.arange(L, dtype=jnp.int32)
    u = (2.0 * (p % w).astype(jnp.float32) + 1.0) / w - 1.0           # (L,)
    dv = (p // w).astype(jnp.float32) * (2.0 / h)                     # (L,)
    c = gx[:, None] * u[None, :] + phase[:, None] + gy[:, None] * dv[None, :]
    sc = jnp.sin(c)                                                   # (2F, L)
    cc = jnp.cos(c)                                                   # (2F, L)

    # Per-step row phase: beta0[s, k] = gy[k] * v(s * tile_h).
    row0 = jnp.arange(nsteps, dtype=jnp.float32) * float(tile_h)
    v0 = (2.0 * row0 + 1.0) / h - 1.0                                 # (nsteps,)
    beta0 = v0[:, None] * gy[None, :]                                 # (nsteps, 2F)
    beta = jnp.stack([jnp.sin(beta0), jnp.cos(beta0)], axis=-1)       # (nsteps, 2F, 2)

    # VMEM accounting: 2 resident tables + double-buffered output (+ tiny
    # beta blocks); keep ~30% headroom, cap at ~75% of physical VMEM.
    buffer_bytes = 6 * two_f * L * 4 + 4 * nsteps * two_f * 2 * 4
    vmem_limit = int(min(cap * 3 // 4, max(32 << 20, int(buffer_bytes * 1.3))))

    out_flat = pl.pallas_call(
        _pe_flat_kernel,
        out_shape=jax.ShapeDtypeStruct((two_f, h * w), dtype),
        grid_spec=pltpu.PrefetchScalarGridSpec(
            num_scalar_prefetch=0,
            grid=(nsteps,),
            in_specs=[
                # sin/cos tables: constant block index -> DMA'd once, resident.
                pl.BlockSpec((two_f, L), lambda s: (0, 0)),
                pl.BlockSpec((two_f, L), lambda s: (0, 0)),
                # per-step row phase, indexed on the leading axis.
                pl.BlockSpec((1, two_f, 2), lambda s: (s, 0, 0)),
            ],
            out_specs=pl.BlockSpec((two_f, L), lambda s: (0, s)),
        ),
        compiler_params=pltpu.CompilerParams(
            dimension_semantics=("parallel",),
            vmem_limit_bytes=vmem_limit,
        ),
    )(sc, cc, beta)

    # Free row-major reinterpretation back to the PyTorch CHW layout.
    return out_flat.reshape(two_f, h, w)


def _reference(gaussian_matrix, size):
    """Pure-JAX reference mirroring the PyTorch forward, for verification."""
    h, w = size
    grid = jnp.ones((h, w), jnp.float32)
    y_embed = (jnp.cumsum(grid, axis=0) - 0.5) / h
    x_embed = (jnp.cumsum(grid, axis=1) - 0.5) / w
    coords = jnp.stack([x_embed, y_embed], axis=-1)
    coords = 2.0 * coords - 1.0
    proj = 2.0 * jnp.pi * jnp.matmul(
        coords, gaussian_matrix, precision=jax.lax.Precision.HIGHEST)
    pe = jnp.concatenate([jnp.sin(proj), jnp.cos(proj)], axis=-1)
    return jnp.transpose(pe, (2, 0, 1))


if __name__ == "__main__":
    num_pos_feats = 64
    scale = 1.0

    key = jax.random.PRNGKey(0)
    # Deterministic stand-in for scale * torch.randn((2, num_pos_feats)).
    gaussian_matrix = scale * jax.random.normal(
        key, (2, num_pos_feats), dtype=jnp.float32)

    # Small module-consistent test + the typical SAM image-encoder grid.
    for size in [(16, 16), (64, 64)]:
        out = jax.block_until_ready(
            position_embedding_random(gaussian_matrix, size))
        assert out.shape == (2 * num_pos_feats,) + size, out.shape
        assert out.dtype == jnp.float32

        ref = _reference(gaussian_matrix, size)
        # The angle-addition rewrite adds ~1 extra fp32 rounding per element;
        # absolute error stays at the ~1e-6 level for O(1) sin/cos values.
        assert jnp.allclose(out, ref, atol=1e-4, rtol=1e-4), f"mismatch at {size}"

    print("KERNEL_OK")
</pallas_src>

<mosaic_0001>
module attributes {stable_mosaic.version = 11 : i64} {
  func.func @_pe_flat_kernel(%arg0: i32, %arg1: memref<128x128xf32, #tpu.memory_space<vmem>>, %arg2: memref<128x128xf32, #tpu.memory_space<vmem>>, %arg3: memref<1x128x2xf32, #tpu.memory_space<vmem>>, %arg4: memref<128x128xf32, #tpu.memory_space<vmem>>) attributes {dimension_semantics = [#tpu.dimension_semantics<parallel>], iteration_bounds = array<i64: 2>, scalar_prefetch = 0 : i64, scratch_operands = 0 : i64, tpu.core_type = #tpu.core_type<tc>, window_params = [{pipeline_mode = #tpu.pipeline_mode<synchronous>, transform_indices = @transform_0, window_bounds = array<i64: 128, 128>}, {pipeline_mode = #tpu.pipeline_mode<synchronous>, transform_indices = @transform_1, window_bounds = array<i64: 128, 128>}, {transform_indices = @transform_2, window_bounds = array<i64: 1, 128, 2>}, {transform_indices = @transform_3, window_bounds = array<i64: 128, 128>}]} {
    %c0 = arith.constant 0 : index
    %c0_0 = arith.constant 0 : index
    %c0_1 = arith.constant 0 : index
    %0 = vector.load %arg3[%c0, %c0_0, %c0_1] : memref<1x128x2xf32, #tpu.memory_space<vmem>>, vector<1x128x2xf32>
    %1 = vector.extract_strided_slice %0 {offsets = [0, 0, 0], sizes = [1, 128, 1], strides = [1, 1, 1]} : vector<1x128x2xf32> to vector<1x128x1xf32>
    %2 = vector.shape_cast %1 : vector<1x128x1xf32> to vector<128x1xf32>
    %3 = vector.extract_strided_slice %0 {offsets = [0, 0, 1], sizes = [1, 128, 1], strides = [1, 1, 1]} : vector<1x128x2xf32> to vector<1x128x1xf32>
    %4 = vector.shape_cast %3 : vector<1x128x1xf32> to vector<128x1xf32>
    %c0_2 = arith.constant 0 : index
    %c0_3 = arith.constant 0 : index
    %5 = vector.load %arg1[%c0_2, %c0_3] : memref<128x128xf32, #tpu.memory_space<vmem>>, vector<128x128xf32>
    %6 = vector.broadcast %4 : vector<128x1xf32> to vector<128x128xf32>
    %7 = arith.mulf %5, %6 : vector<128x128xf32>
    %c0_4 = arith.constant 0 : index
    %c0_5 = arith.constant 0 : index
    %8 = vector.load %arg2[%c0_4, %c0_5] : memref<128x128xf32, #tpu.memory_space<vmem>>, vector<128x128xf32>
    %9 = vector.broadcast %2 : vector<128x1xf32> to vector<128x128xf32>
    %10 = arith.mulf %8, %9 : vector<128x128xf32>
    %11 = arith.addf %7, %10 : vector<128x128xf32>
    %c0_6 = arith.constant 0 : index
    %c0_7 = arith.constant 0 : index
    %12 = vector.load %arg4[%c0_6, %c0_7] : memref<128x128xf32, #tpu.memory_space<vmem>>, vector<128x128xf32>
    tpu.vector_store %arg4[%c0_6, %c0_7], %11 {strides = array<i32>} : memref<128x128xf32, #tpu.memory_space<vmem>>, vector<128x128xf32>,
    return
  }
  func.func @transform_0(%arg0: i32) -> (i32, i32) {
    %c0_i32 = arith.constant 0 : i32
    %c0_i32_0 = arith.constant 0 : i32
    %c0_i32_1 = arith.constant 0 : i32
    return %c0_i32, %c0_i32_0 : i32, i32
  }
  func.func @transform_1(%arg0: i32) -> (i32, i32) {
    %c0_i32 = arith.constant 0 : i32
    %c0_i32_0 = arith.constant 0 : i32
    %c0_i32_1 = arith.constant 0 : i32
    return %c0_i32, %c0_i32_0 : i32, i32
  }
  func.func @transform_2(%arg0: i32) -> (i32, i32, i32) {
    %c0_i32 = arith.constant 0 : i32
    %c0_i32_0 = arith.constant 0 : i32
    %c0_i32_1 = arith.constant 0 : i32
    return %arg0, %c0_i32, %c0_i32_0 : i32, i32, i32
  }
  func.func @transform_3(%arg0: i32) -> (i32, i32) {
    %c0_i32 = arith.constant 0 : i32
    %c0_i32_0 = arith.constant 0 : i32
    return %c0_i32, %arg0 : i32, i32
  }
}

</mosaic_0001>

<bundles_post_ra>
// kernel: position_embedding_random.1
= control target key start
LH: loop header
LB: loop body
LE: loop exit
PB: predicated region body
PF: predicated region fallthrough
CT: control target
= control target key end

     0   :  { %s661_s12 = smov 0   ;;  %s663_s13 = smov 0   ;;  %s866_s0 = inlined_call_operand.vmem [shape: f32[128,128], index: 0, kind: input, shape index: {}]   ;;  %s867_s1 = inlined_call_operand.vmem [shape: f32[128,128], index: 1, kind: input, shape index: {}]   ;;  %s868_s2 = inlined_call_operand.vmem [shape: f32[2,128,2], index: 2, kind: input, shape index: {}]   ;;  %s869_s3 = inlined_call_operand.vmem [shape: f32[128,256], index: 3, kind: output, shape index: {}]  }
   0x1   :  { %s665_s14 = smov 0  }
   0x2 LB: > { %s674_s15 = sadd.s32 4294967295, %s637_s14   ;;  %s676_s16 = sadd.s32 1, %s637_s14   ;;  %s637_s14 = sphi %s665_s14, %s873_s14   ;;  %s633_s13 = sphi %s663_s13, %s872_s13   ;;  %s629_s12 = sphi %s661_s12, %s871_s12  }
   0x3   : > { %s85_s17 = ssub.s32 %s637_s14, %s676_s16  ;;  %s88_s18 = sadd.s32 1, %s633_s13 }
   0x4   : > { %p86_p0 = scmp.eq.s32.totalorder %s85_s17, 0  ;;  %p98_p1 = scmp.ne.s32.totalorder %s633_s13, %s629_s12 }
   0x5   : > { %p99_p2 = scmp.eq.s32.totalorder %s674_s15, 1  ;;  %p576_p3 = scmp.ge.s32.totalorder %s637_s14, 1 }
   0x6   : > { %s684_s19 = scalar_select %p86_p0, %s633_s13, %s88_s18  }
   0x7   : > { %p686_p4 = por %p99_p2, %p98_p1  ;;  %p137_p5 = scmp.lt.s32.totalorder %s637_s14, 3 }
   0x9   : > { %p138_p6 = pnand %p576_p3, %p137_p5 }
   0xa   : > { %p160_p7 = scmp.lt.s32.totalorder (!%p138_p6), %s674_s15, 1  ;;  %v639_v0 = vmov (!%p138_p6), 1   ;;  %v640_v17 = vmov (!%p138_p6), 0   ;;  %s157_s26 = sand.u32 (!%p138_p6), 1, %s629_s12   ;;  %v181_v34 = vld [vmem:[%s866_s0] sm:$0xff] (!%p138_p6)  ;;  %v182_v35 = vld [vmem:[%s866_s0 + $0x8] sm:$0xff] (!%p138_p6) }
   0xb   : > { %141 = sbr.rel (%p138_p6) target bundleno = 225 (0xe1), region = 32  ;;  %612 = vset.pattern.permute.xlu1 (!%p138_p6), %v639_v0  ;;  %611 = vset.pattern.permute.xlu0 (!%p138_p6), %v639_v0  ;;  %v294_v36 = vld [vmem:[%s867_s1 + $0x8] sm:$0xff] (!%p138_p6)  ;;  %v293_v37 = vld [vmem:[%s867_s1] sm:$0xff] (!%p138_p6)  ;;  %s577_s8 = sshll.u32 (!%p138_p6), %s157_s26, 7  ;;  %v183_v40 = vld [vmem:[%s866_s0 + $0x10] sm:$0xff] (!%p138_p6) }
   0xc   : > { %v184_v45 = vld [vmem:[%s866_s0 + $0x18] sm:$0xff] (!%p138_p6)  ;;  %v295_v46 = vld [vmem:[%s867_s1 + $0x10] sm:$0xff] (!%p138_p6)  ;;  %v186_v54 = vld [vmem:[%s866_s0 + $0x28] sm:$0xff] (!%p138_p6)  ;;  %s739_s24 = scalar_lea.vmem (!%p138_p6), [#allocation2], %s577_s8 }
   0xd   : > { %v296_v47 = vld [vmem:[%s867_s1 + $0x18] sm:$0xff] (!%p138_p6)  ;;  %v185_v57 = vld [vmem:[%s866_s0 + $0x20] sm:$0xff] (!%p138_p6)  ;;  %v298_v59 = vld [vmem:[%s867_s1 + $0x28] sm:$0xff] (!%p138_p6) }
   0xe   : > { %v297_v58 = vld [vmem:[%s867_s1 + $0x20] sm:$0xff] (!%p138_p6) }
  0x12   : > { %s161_s21 = scalar_select %p160_p7, %s674_s15, 1 }
  0x13   : > { %s581_s29 = sshll.u32 (%p686_p4), %s674_s15, 3 }
  0x14   : > { %s584_s22 = sshll.u32 %s161_s21, 7  ;;  %s429_s5 = scalar_lea.vmem (%p686_p4), %s869_s3, %s581_s29 }
  0x15   : > { %s164_s25 = scalar_lea.vmem %s868_s2, %s584_s22 }
  0x16   : > { %v167_v1 = vld [vmem:[%s164_s25 + $0x10] sm:$0xff]  ;;  %v165_v2 = vld [vmem:[%s164_s25] sm:$0xff]  ;;  %v168_v3 = vld [vmem:[%s164_s25 + $0x18] sm:$0xff] }
  0x17   : > { %209 = vperm.xlu1 %612, %v167_v1   ;;  %199 = vperm.xlu0 %611, %v165_v2   ;;  %v166_v4 = vld [vmem:[%s164_s25 + $0x8] sm:$0xff]  ;;  %v169_v6 = vld [vmem:[%s164_s25 + $0x20] sm:$0xff]  ;;  %v172_v7 = vld [vmem:[%s164_s25 + $0x38] sm:$0xff] }
  0x18   : > { %v170_v5 = vld [vmem:[%s164_s25 + $0x28] sm:$0xff]  ;;  %v171_v8 = vld [vmem:[%s164_s25 + $0x30] sm:$0xff]  ;;  %v173_v10 = vld [vmem:[%s164_s25 + $0x40] sm:$0xff] }
  0x19   : > { %v174_v9 = vld [vmem:[%s164_s25 + $0x48] sm:$0xff]  ;;  %v176_v11 = vld [vmem:[%s164_s25 + $0x58] sm:$0xff]  ;;  %v175_v12 = vld [vmem:[%s164_s25 + $0x50] sm:$0xff] }
  0x1a   : > { %v178_v13 = vld [vmem:[%s164_s25 + $0x68] sm:$0xff]  ;;  %v177_v14 = vld [vmem:[%s164_s25 + $0x60] sm:$0xff]  ;;  %v180_v15 = vld [vmem:[%s164_s25 + $0x78] sm:$0xff] }
  0x1b   : > { %214 = vperm.xlu1 %612, %v168_v3   ;;  %204 = vperm.xlu0 %611, %v166_v4   ;;  %v179_v16 = vld [vmem:[%s164_s25 + $0x70] sm:$0xff] }
  0x1f   : > { %224 = vperm.xlu1 %612, %v170_v5   ;;  %219 = vperm.xlu0 %611, %v169_v6  }
  0x23   : > { %234 = vperm.xlu1 %612, %v172_v7   ;;  %229 = vperm.xlu0 %611, %v171_v8  }
  0x27   : > { %244 = vperm.xlu1 %612, %v174_v9   ;;  %239 = vperm.xlu0 %611, %v173_v10  }
  0x2b   : > { %254 = vperm.xlu1 %612, %v176_v11   ;;  %249 = vperm.xlu0 %611, %v175_v12  }
  0x2f   : > { %264 = vperm.xlu1 %612, %v178_v13   ;;  %259 = vperm.xlu0 %611, %v177_v14  }
  0x33   : > { %274 = vperm.xlu1 %612, %v180_v15   ;;  %269 = vperm.xlu0 %611, %v179_v16  }
  0x37   : > { %614 = vset.pattern.permute.xlu1 %v640_v17  ;;  %613 = vset.pattern.permute.xlu0 %v640_v17  ;;  %v189_v17 = vld [vmem:[%s866_s0 + $0x40] sm:$0xff] }
  0x38   : > { %314 = vperm.xlu1 %614, %v166_v4   ;;  %310 = vperm.xlu0 %613, %v165_v2   ;;  %v188_v2 = vld [vmem:[%s866_s0 + $0x38] sm:$0xff] }
  0x3c   : > { %318 = vperm.xlu1 %614, %v167_v1   ;;  %322 = vperm.xlu0 %613, %v168_v3  }
  0x40   : > { %326 = vperm.xlu1 %614, %v169_v6   ;;  %330 = vperm.xlu0 %613, %v170_v5   ;;  %v187_v5 = vld [vmem:[%s866_s0 + $0x30] sm:$0xff] }
  0x41   : > { %v299_v6 = vld [vmem:[%s867_s1 + $0x30] sm:$0xff] }
  0x44   : > { %334 = vperm.xlu1 %614, %v171_v8   ;;  %338 = vperm.xlu0 %613, %v172_v7   ;;  %v300_v7 = vld [vmem:[%s867_s1 + $0x38] sm:$0xff] }
  0x48   : > { %342 = vperm.xlu1 %614, %v173_v10   ;;  %346 = vperm.xlu0 %613, %v174_v9  }
  0x4c   : > { %350 = vperm.xlu1 %614, %v175_v12   ;;  %354 = vperm.xlu0 %613, %v176_v11  }
  0x50   : > { %358 = vperm.xlu1 %614, %v177_v14   ;;  %362 = vperm.xlu0 %613, %v178_v13   ;;  %v190_v14 = vld [vmem:[%s866_s0 + $0x48] sm:$0xff] }
  0x54   : > { %366 = vperm.xlu1 %614, %v179_v16   ;;  %370 = vperm.xlu0 %613, %v180_v15  }
  0x96   : > { %v210_v18 = vpop.permute.xlu1 %209  ;;  %v200_v19 = vpop.permute.xlu0 %199 }
  0x97   : > { %v277_v41 = vmul.f32 %v200_v19, %v181_v34  ;;  %v279_v52 = vmul.f32 %v210_v18, %v183_v40  ;;  %v301_v18 = vld [vmem:[%s867_s1 + $0x40] sm:$0xff]  ;;  %v302_v19 = vld [vmem:[%s867_s1 + $0x48] sm:$0xff]  ;;  %v192_v34 = vld [vmem:[%s866_s0 + $0x58] sm:$0xff] }
  0x9a   : > { %v215_v20 = vpop.permute.xlu1 %214  ;;  %v205_v21 = vpop.permute.xlu0 %204 }
  0x9b   : > { %v278_v42 = vmul.f32 %v205_v21, %v182_v35  ;;  %v280_v53 = vmul.f32 %v215_v20, %v184_v45 }
  0x9e   : > { %v225_v22 = vpop.permute.xlu1 %224  ;;  %v220_v23 = vpop.permute.xlu0 %219 }
  0x9f   : > { %v282_v0 = vmul.f32 %v225_v22, %v186_v54  ;;  %v281_v1 = vmul.f32 %v220_v23, %v185_v57  ;;  %v196_v54 = vld [vmem:[%s866_s0 + $0x78] sm:$0xff]  ;;  %v195_v57 = vld [vmem:[%s866_s0 + $0x70] sm:$0xff] }
  0xa2   : > { %v235_v24 = vpop.permute.xlu1 %234  ;;  %v230_v25 = vpop.permute.xlu0 %229 }
  0xa3   : > { %v284_v12 = vmul.f32 %v235_v24, %v188_v2  ;;  %v283_v13 = vmul.f32 %v230_v25, %v187_v5 }
  0xa6   : > { %v695_v26 = vpop.permute.xlu1 %244  ;;  %v697_v27 = vpop.permute.xlu0 %239 }
  0xa7   : > { %v286_v24 = vmul.f32 %v695_v26, %v190_v14  ;;  %v285_v25 = vmul.f32 %v697_v27, %v189_v17  ;;  %v303_v26 = vld [vmem:[%s867_s1 + $0x50] sm:$0xff]  ;;  %v304_v27 = vld [vmem:[%s867_s1 + $0x58] sm:$0xff] }
  0xaa   : > { %v699_v28 = vpop.permute.xlu1 %254  ;;  %v701_v29 = vpop.permute.xlu0 %249 }
  0xae   : > { %v703_v30 = vpop.permute.xlu1 %264  ;;  %v705_v31 = vpop.permute.xlu0 %259 }
  0xb2   : > { %v707_v32 = vpop.permute.xlu1 %274  ;;  %v709_v33 = vpop.permute.xlu0 %269 }
  0xb7   : > { %v315_v38 = vpop.permute.xlu1 %314  ;;  %v311_v39 = vpop.permute.xlu0 %310 }
  0xb8   : > { %v374_v43 = vmul.f32 %v315_v38, %v294_v36  ;;  %v373_v44 = vmul.f32 %v311_v39, %v293_v37  ;;  %v191_v37 = vld [vmem:[%s866_s0 + $0x50] sm:$0xff] }
  0xba   : > { %v390_v48 = vadd.f32 %v374_v43, %v278_v42  ;;  %v389_v49 = vadd.f32 %v373_v44, %v277_v41  ;;  %v288_v42 = vmul.f32 %v699_v28, %v192_v34  ;;  %v287_v43 = vmul.f32 %v701_v29, %v191_v37  ;;  %v194_v44 = vld [vmem:[%s866_s0 + $0x68] sm:$0xff]  ;;  %v305_v28 = vld [vmem:[%s867_s1 + $0x60] sm:$0xff] }
  0xbb   : > { %v319_v50 = vpop.permute.xlu1 %318  ;;  %v323_v51 = vpop.permute.xlu0 %322  ;;  %v306_v29 = vld [vmem:[%s867_s1 + $0x68] sm:$0xff] }
  0xbc   : > { %406 = vst [vmem:[%s739_s24 + $0x8] sm:$0xff] %v390_v48  ;;  %405 = vst [vmem:[%s739_s24] sm:$0xff] %v389_v49  ;;  %v375_v55 = vmul.f32 %v319_v50, %v295_v46  ;;  %v376_v56 = vmul.f32 %v323_v51, %v296_v47  ;;  %v193_v47 = vld [vmem:[%s866_s0 + $0x60] sm:$0xff] }
  0xbe   : > { %v391_v60 = vadd.f32 %v375_v55, %v279_v52  ;;  %v392_v61 = vadd.f32 %v376_v56, %v280_v53  ;;  %v290_v52 = vmul.f32 %v703_v30, %v194_v44  ;;  %v289_v53 = vmul.f32 %v705_v31, %v193_v47  ;;  %v307_v30 = vld [vmem:[%s867_s1 + $0x70] sm:$0xff]  ;;  %v308_v31 = vld [vmem:[%s867_s1 + $0x78] sm:$0xff] }
  0xbf   : > { %v327_v62 = vpop.permute.xlu1 %326  ;;  %v331_v63 = vpop.permute.xlu0 %330 }
  0xc0   : > { %407 = vst [vmem:[%s739_s24 + $0x10] sm:$0xff] %v391_v60  ;;  %408 = vst [vmem:[%s739_s24 + $0x18] sm:$0xff] %v392_v61  ;;  %v377_v3 = vmul.f32 %v327_v62, %v297_v58  ;;  %v378_v4 = vmul.f32 %v331_v63, %v298_v59  ;;  %v292_v62 = vmul.f32 %v707_v32, %v196_v54 }
  0xc1   : > { %v291_v63 = vmul.f32 %v709_v33, %v195_v57 }
  0xc2   : > { %v393_v8 = vadd.f32 %v377_v3, %v281_v1  ;;  %v394_v9 = vadd.f32 %v378_v4, %v282_v0 }
  0xc3   : > { %v335_v10 = vpop.permute.xlu1 %334  ;;  %v339_v11 = vpop.permute.xlu0 %338  ;;  %v487_v32 = vld [vmem:[%s739_s24] sm:$0xff] (%p686_p4)  ;;  %v489_v33 = vld [vmem:[%s739_s24 + $0x8] sm:$0xff] (%p686_p4) }
  0xc4   : > { %409 = vst [vmem:[%s739_s24 + $0x20] sm:$0xff] %v393_v8  ;;  %410 = vst [vmem:[%s739_s24 + $0x28] sm:$0xff] %v394_v9  ;;  %v379_v15 = vmul.f32 %v335_v10, %v299_v6  ;;  %v380_v16 = vmul.f32 %v339_v11, %v300_v7 }
  0xc5   : > { %488 = vst [vmem:[%s429_s5] sm:$0xff] (%p686_p4), %v487_v32  ;;  %490 = vst [vmem:[%s429_s5 + $0x10] sm:$0xff] (%p686_p4), %v489_v33 }
  0xc6   : > { %v395_v20 = vadd.f32 %v379_v15, %v283_v13  ;;  %v396_v21 = vadd.f32 %v380_v16, %v284_v12 }
  0xc7   : > { %v343_v22 = vpop.permute.xlu1 %342  ;;  %v347_v23 = vpop.permute.xlu0 %346  ;;  %v491_v4 = vld [vmem:[%s739_s24 + $0x10] sm:$0xff] (%p686_p4)  ;;  %v493_v5 = vld [vmem:[%s739_s24 + $0x18] sm:$0xff] (%p686_p4) }
  0xc8   : > { %411 = vst [vmem:[%s739_s24 + $0x30] sm:$0xff] %v395_v20  ;;  %412 = vst [vmem:[%s739_s24 + $0x38] sm:$0xff] %v396_v21  ;;  %v381_v35 = vmul.f32 %v343_v22, %v301_v18  ;;  %v382_v36 = vmul.f32 %v347_v23, %v302_v19 }
  0xc9   : > { %492 = vst [vmem:[%s429_s5 + $0x20] sm:$0xff] (%p686_p4), %v491_v4  ;;  %494 = vst [vmem:[%s429_s5 + $0x30] sm:$0xff] (%p686_p4), %v493_v5 }
  0xca   : > { %v397_v38 = vadd.f32 %v381_v35, %v285_v25  ;;  %v398_v39 = vadd.f32 %v382_v36, %v286_v24 }
  0xcb   : > { %v351_v40 = vpop.permute.xlu1 %350  ;;  %v355_v41 = vpop.permute.xlu0 %354  ;;  %v495_v6 = vld [vmem:[%s739_s24 + $0x20] sm:$0xff] (%p686_p4)  ;;  %v497_v7 = vld [vmem:[%s739_s24 + $0x28] sm:$0xff] (%p686_p4) }
  0xcc   : > { %413 = vst [vmem:[%s739_s24 + $0x40] sm:$0xff] %v397_v38  ;;  %414 = vst [vmem:[%s739_s24 + $0x48] sm:$0xff] %v398_v39  ;;  %v383_v45 = vmul.f32 %v351_v40, %v303_v26  ;;  %v384_v46 = vmul.f32 %v355_v41, %v304_v27 }
  0xcd   : > { %496 = vst [vmem:[%s429_s5 + $0x40] sm:$0xff] (%p686_p4), %v495_v6  ;;  %498 = vst [vmem:[%s429_s5 + $0x50] sm:$0xff] (%p686_p4), %v497_v7 }
  0xce   : > { %v399_v48 = vadd.f32 %v383_v45, %v287_v43  ;;  %v400_v49 = vadd.f32 %v384_v46, %v288_v42 }
  0xcf   : > { %v359_v50 = vpop.permute.xlu1 %358  ;;  %v363_v51 = vpop.permute.xlu0 %362  ;;  %v499_v8 = vld [vmem:[%s739_s24 + $0x30] sm:$0xff] (%p686_p4)  ;;  %v501_v9 = vld [vmem:[%s739_s24 + $0x38] sm:$0xff] (%p686_p4) }
  0xd0   : > { %415 = vst [vmem:[%s739_s24 + $0x50] sm:$0xff] %v399_v48  ;;  %416 = vst [vmem:[%s739_s24 + $0x58] sm:$0xff] %v400_v49  ;;  %v385_v55 = vmul.f32 %v359_v50, %v305_v28  ;;  %v386_v56 = vmul.f32 %v363_v51, %v306_v29 }
  0xd1   : > { %500 = vst [vmem:[%s429_s5 + $0x60] sm:$0xff] (%p686_p4), %v499_v8  ;;  %502 = vst [vmem:[%s429_s5 + $0x70] sm:$0xff] (%p686_p4), %v501_v9 }
  0xd2   : > { %v401_v58 = vadd.f32 %v385_v55, %v289_v53  ;;  %v402_v59 = vadd.f32 %v386_v56, %v290_v52  ;;  %427 = sbr.rel (!%p686_p4) target bundleno = 225 (0xe1), region = 36 }
  0xd3   : > { %v367_v60 = vpop.permute.xlu1 %366  ;;  %v371_v61 = vpop.permute.xlu0 %370  ;;  %v503_v10 = vld [vmem:[%s739_s24 + $0x40] sm:$0xff] (%p686_p4)  ;;  %v505_v11 = vld [vmem:[%s739_s24 + $0x48] sm:$0xff] (%p686_p4) }
  0xd4   : > { %417 = vst [vmem:[%s739_s24 + $0x60] sm:$0xff] %v401_v58  ;;  %418 = vst [vmem:[%s739_s24 + $0x68] sm:$0xff] %v402_v59  ;;  %v387_v0 = vmul.f32 %v367_v60, %v307_v30  ;;  %v388_v1 = vmul.f32 %v371_v61, %v308_v31 }
  0xd5   : > { %504 = vst [vmem:[%s429_s5 + $0x80] sm:$0xff] (%p686_p4), %v503_v10  ;;  %506 = vst [vmem:[%s429_s5 + $0x90] sm:$0xff] (%p686_p4), %v505_v11 }
  0xd6   : > { %v403_v2 = vadd.f32 %v387_v0, %v291_v63  ;;  %v404_v3 = vadd.f32 %v388_v1, %v292_v62 }
  0xd7   : > { %v507_v12 = vld [vmem:[%s739_s24 + $0x50] sm:$0xff] (%p686_p4)  ;;  %v509_v13 = vld [vmem:[%s739_s24 + $0x58] sm:$0xff] (%p686_p4) }
  0xd8   : > { %419 = vst [vmem:[%s739_s24 + $0x70] sm:$0xff] %v403_v2  ;;  %420 = vst [vmem:[%s739_s24 + $0x78] sm:$0xff] %v404_v3 }
  0xd9   : > { %508 = vst [vmem:[%s429_s5 + $0xa0] sm:$0xff] %v507_v12  ;;  %510 = vst [vmem:[%s429_s5 + $0xb0] sm:$0xff] %v509_v13 }
  0xdb   : > { %v511_v14 = vld [vmem:[%s739_s24 + $0x60] sm:$0xff]  ;;  %v513_v15 = vld [vmem:[%s739_s24 + $0x68] sm:$0xff] }
  0xdc   : > { %512 = vst [vmem:[%s429_s5 + $0xc0] sm:$0xff] %v511_v14  ;;  %514 = vst [vmem:[%s429_s5 + $0xd0] sm:$0xff] %v513_v15 }
  0xdf   : > { %v515_v16 = vld [vmem:[%s739_s24 + $0x70] sm:$0xff]  ;;  %v517_v17 = vld [vmem:[%s739_s24 + $0x78] sm:$0xff] }
  0xe0   : > { %516 = vst [vmem:[%s429_s5 + $0xe0] sm:$0xff] %v515_v16  ;;  %518 = vst [vmem:[%s429_s5 + $0xf0] sm:$0xff] %v517_v17 }
  0xe1 PF: > { %p10_p8 = scmp.ge.s32.totalorder %s676_s16, 4   ;;  %s871_s12 = smov %s633_s13 }
  0xe2   : > { %s872_s13 = smov %s684_s19  ;;  %s873_s14 = smov %s676_s16 }
  0xe3   :  { %12 = sbr.rel (!%p10_p8) target bundleno = 2 (0x2), region = 100 }

</bundles_post_ra>
